<compile_context>
chip_gen: v6e
topology: v6e:2x2x1
jax: 0.10.0
libtpu: 0.0.40
codegen_flags: <defaults>
</compile_context>

<pallas_src>
import jax
import jax.numpy as jnp
from jax.experimental import pallas as pl
from jax.experimental.pallas import tpu as pltpu

EPS = 1e-5


def _round_up(x, m):
    return (x + m - 1) // m * m


def _conv_stats_kernel(x_ref, w_ref, y_ref, sum_ref, ssq_ref):
    """Pass 1: folded (depthwise+pointwise+bias) conv tile + BN sum / sum-of-sq."""
    n = pl.program_id(0)
    j = pl.program_id(1)

    # One MXU matmul over the folded (T*Cin + 1) contraction, f32 accumulation.
    y = jnp.dot(w_ref[...], x_ref[0], preferred_element_type=jnp.float32)  # (Cout_pad, tile)
    y_ref[0] = y.astype(y_ref.dtype)

    @pl.when((n == 0) & (j == 0))
    def _():
        sum_ref[...] = jnp.zeros_like(sum_ref)
        ssq_ref[...] = jnp.zeros_like(ssq_ref)

    # Padded Mn columns are all-zero (including the bias ones-row), so they
    # contribute exactly 0 here -> no masking needed; wrapper divides by true M.
    sum_ref[...] += jnp.sum(y, axis=1, keepdims=True)
    ssq_ref[...] += jnp.sum(y * y, axis=1, keepdims=True)


def _norm_act_kernel(y_ref, p_ref, o_ref):
    """Pass 2: BN normalize (precomputed scale/shift) + PReLU."""
    y = y_ref[0].astype(jnp.float32)           # (Cout_pad, tile)
    scale = p_ref[0]                           # (Cout_pad, 1)
    shift = p_ref[1]
    alpha = p_ref[2]
    z = y * scale + shift
    o_ref[0] = jnp.where(z >= 0, z, alpha * z).astype(o_ref.dtype)


def dwconv_norm_forward(x, w_dw, w_pw, b_pw, gamma, beta, alpha,
                        kernel_size=3, stride=1, padding=1,
                        tile_m=4096,
                        mxu_dtype=jnp.bfloat16,
                        conv_out_dtype=jnp.bfloat16,
                        out_dtype=jnp.float32):
    """x:     (N, Cin, D, H, W) NCDHW (PyTorch convention)
       w_dw:  (Cin, 1, K, K, K)    depthwise Conv3d weight (groups=Cin, no bias)
       w_pw:  (Cout, Cin, 1, 1, 1) pointwise Conv3d weight
       b_pw:  (Cout,)              pointwise Conv3d bias
       gamma, beta: (Cout,) BatchNorm affine;  alpha: scalar PReLU slope."""
    N, Cin, D, H, W = x.shape
    Cout = w_pw.shape[0]
    K, p, s = kernel_size, padding, stride
    T = K * K * K

    Do = (D + 2 * p - K) // s + 1
    Ho = (H + 2 * p - K) // s + 1
    Wo = (W + 2 * p - K) // s + 1
    Mn = Do * Ho * Wo          # per-sample spatial size
    M = N * Mn                 # BN population size per channel

    in_b = jnp.dtype(mxu_dtype).itemsize
    y_b = jnp.dtype(conv_out_dtype).itemsize

    # ---- glue: single bf16 cast + pad, then K^3 pure strided-slice taps -----
    xq = x.astype(mxu_dtype)
    xp = jnp.pad(xq, ((0, 0), (0, 0), (p, p), (p, p), (p, p)))
    taps = []
    for kd in range(K):
        for kh in range(K):
            for kw in range(K):
                sl = xp[:, :,
                        kd:kd + (Do - 1) * s + 1:s,
                        kh:kh + (Ho - 1) * s + 1:s,
                        kw:kw + (Wo - 1) * s + 1:s]       # (N, Cin, Do, Ho, Wo)
                taps.append(sl.reshape(N, Cin, Mn))
    taps.append(jnp.ones((N, 1, Mn), mxu_dtype))          # bias ones-row
    x_taps = jnp.concatenate(taps, axis=1)                # (N, T*Cin+1, Mn)

    # ---- TPU-friendly padding & VMEM-aware tile ------------------------------
    Kdim = T * Cin + 1
    Kdim_pad = _round_up(Kdim, 16)        # bf16 sublane packing of the contraction
    Cout_pad = _round_up(Cout, 16)

    try:
        vmem_cap = int(pltpu.get_tpu_info().vmem_capacity_bytes)
    except Exception:
        vmem_cap = 64 * 1024 * 1024       # conservative: v7x physical VMEM
    vmem_budget = min(int(vmem_cap * 0.6), 96 * 1024 * 1024)
    fixed = 2 * Cout_pad * Kdim_pad * in_b + 4 * Cout_pad * 4
    per_col = Kdim_pad * in_b + Cout_pad * y_b            # bytes per output column
    avail = int(vmem_budget * 0.8) - fixed
    tile_fit = max(128, (avail // (2 * per_col)) // 128 * 128)   # 2x = double buffer
    tile = min(_round_up(tile_m, 128), tile_fit, _round_up(Mn, 128))
    Mn_pad = _round_up(Mn, tile)
    n_tiles = Mn_pad // tile
    # TODO(synk): if tile_fit forces a small tile (large Cin on v7x), add
    #   pipeline_mode=pl.Buffered(3) on the x_taps BlockSpec.

    x_taps = jnp.pad(x_taps, ((0, 0), (0, Kdim_pad - Kdim), (0, Mn_pad - Mn)))

    # ---- fold depthwise weights + pointwise bias into one matmul weight ------
    w_dw_tc = jnp.transpose(w_dw.reshape(Cin, T).astype(jnp.float32), (1, 0))   # (T, Cin)
    w_pw_2d = w_pw.reshape(Cout, Cin).astype(jnp.float32)
    w_hat = (w_pw_2d[:, None, :] * w_dw_tc[None, :, :]).reshape(Cout, T * Cin)
    w_hat = jnp.concatenate([w_hat, b_pw.astype(jnp.float32).reshape(Cout, 1)], axis=1)
    w_hat = jnp.pad(w_hat, ((0, Cout_pad - Cout), (0, Kdim_pad - Kdim)))
    w_hat = w_hat.astype(mxu_dtype)

    # ---- pass 1: conv + global BN statistics (resident accumulator outputs) --
    y_conv, ch_sum, ch_ssq = pl.pallas_call(
        _conv_stats_kernel,
        grid=(N, n_tiles),
        in_specs=[
            pl.BlockSpec((1, Kdim_pad, tile), lambda n, j: (n, 0, j)),     # tap panel tile
            pl.BlockSpec((Cout_pad, Kdim_pad), lambda n, j: (0, 0)),       # folded weight
        ],
        out_specs=[
            pl.BlockSpec((1, Cout_pad, tile), lambda n, j: (n, 0, j)),     # conv tile
            pl.BlockSpec((Cout_pad, 1), lambda n, j: (0, 0)),              # running sum
            pl.BlockSpec((Cout_pad, 1), lambda n, j: (0, 0)),              # running sumsq
        ],
        out_shape=[
            jax.ShapeDtypeStruct((N, Cout_pad, Mn_pad), conv_out_dtype),
            jax.ShapeDtypeStruct((Cout_pad, 1), jnp.float32),
            jax.ShapeDtypeStruct((Cout_pad, 1), jnp.float32),
        ],
        compiler_params=pltpu.CompilerParams(
            dimension_semantics=("arbitrary", "arbitrary"),
            vmem_limit_bytes=vmem_budget),
    )(x_taps, w_hat)

    # ---- hoisted (Cout,1) BN scale/shift from the global stats ---------------
    # TODO(synk): E[y^2]-E[y]^2 can cancel for channels with |mean| >> std; use a
    #   shifted / two-pass accumulation if that regime matters.
    mean = ch_sum / M
    var = jnp.maximum(ch_ssq / M - mean * mean, 0.0)       # biased variance
    rstd = jax.lax.rsqrt(var + EPS)
    gamma_col = jnp.pad(gamma.astype(jnp.float32).reshape(Cout, 1),
                        ((0, Cout_pad - Cout), (0, 0)))
    beta_col = jnp.pad(beta.astype(jnp.float32).reshape(Cout, 1),
                       ((0, Cout_pad - Cout), (0, 0)))
    scale = gamma_col * rstd
    shift = beta_col - mean * scale
    alpha_col = jnp.full((Cout_pad, 1), jnp.asarray(alpha, jnp.float32))
    params = jnp.stack([scale, shift, alpha_col], axis=0)  # (3, Cout_pad, 1)

    # ---- pass 2: normalize + PReLU (megacore-parallel, NC(DHW) layout) -------
    out = pl.pallas_call(
        _norm_act_kernel,
        grid=(N, n_tiles),
        in_specs=[
            pl.BlockSpec((1, Cout_pad, tile), lambda n, j: (n, 0, j)),
            pl.BlockSpec((3, Cout_pad, 1), lambda n, j: (0, 0, 0)),
        ],
        out_specs=pl.BlockSpec((1, Cout_pad, tile), lambda n, j: (n, 0, j)),
        out_shape=jax.ShapeDtypeStruct((N, Cout_pad, Mn_pad), out_dtype),
        compiler_params=pltpu.CompilerParams(
            dimension_semantics=("parallel", "parallel"),
            vmem_limit_bytes=vmem_budget),
    )(y_conv, params)

    # Already (N, Cout, D*H*W)-ordered: slice + free reshape, no transpose.
    return out[:, :Cout, :Mn].reshape(N, Cout, Do, Ho, Wo)


def _reference_forward(x, w_dw, w_pw, b_pw, gamma, beta, alpha, stride, padding):
    """Pure-JAX f32 reference for correctness checking."""
    dn = ('NCDHW', 'OIDHW', 'NCDHW')
    y = jax.lax.conv_general_dilated(
        x, w_dw, window_strides=(stride,) * 3,
        padding=[(padding, padding)] * 3,
        dimension_numbers=dn, feature_group_count=x.shape[1])
    y = jax.lax.conv_general_dilated(
        y, w_pw, window_strides=(1, 1, 1), padding=[(0, 0)] * 3,
        dimension_numbers=dn)
    y = y + b_pw.reshape(1, -1, 1, 1, 1)
    mean = y.mean(axis=(0, 2, 3, 4), keepdims=True)
    var = ((y - mean) ** 2).mean(axis=(0, 2, 3, 4), keepdims=True)
    y = (y - mean) * jax.lax.rsqrt(var + EPS)
    y = y * gamma.reshape(1, -1, 1, 1, 1) + beta.reshape(1, -1, 1, 1, 1)
    return jnp.where(y >= 0, y, alpha * y)


if __name__ == "__main__":
    key = jax.random.PRNGKey(0)
    k1, k2, k3, k4 = jax.random.split(key, 4)

    # Small shapes consistent with the Conv3d module: NCDHW input.
    N, Cin, Cout, D, H, W = 2, 4, 8, 8, 8, 8
    K = 3

    x = jax.random.normal(k1, (N, Cin, D, H, W), jnp.float32)
    w_dw = jax.random.normal(k2, (Cin, 1, K, K, K), jnp.float32) * 0.1
    w_pw = jax.random.normal(k3, (Cout, Cin, 1, 1, 1), jnp.float32) * 0.1
    b_pw = jax.random.normal(k4, (Cout,), jnp.float32) * 0.1
    gamma = jnp.ones((Cout,), jnp.float32)   # BatchNorm weight init
    beta = jnp.zeros((Cout,), jnp.float32)   # BatchNorm bias init
    alpha = 0.25                             # PReLU default init

    # Small M tile so the test exercises the multi-tile grid path.
    out = dwconv_norm_forward(x, w_dw, w_pw, b_pw, gamma, beta, alpha,
                              kernel_size=K, stride=1, padding=1, tile_m=256)
    jax.block_until_ready(out)
    assert out.shape == (N, Cout, D, H, W)

    ref = _reference_forward(x, w_dw, w_pw, b_pw, gamma, beta, alpha,
                             stride=1, padding=1)
    err = float(jnp.max(jnp.abs(out - ref)))
    # bf16 MXU inputs + bf16 y_conv intermediate vs f32 reference.
    assert jnp.allclose(out, ref, rtol=2e-2, atol=2e-2), f"max abs err {err}"

    print("KERNEL_OK")
</pallas_src>

<mosaic_0001>
module attributes {stable_mosaic.version = 11 : i64} {
  func.func @_conv_stats_kernel(%arg0: i32, %arg1: i32, %arg2: memref<1x112x256xbf16, #tpu.memory_space<vmem>>, %arg3: memref<16x112xbf16, #tpu.memory_space<vmem>>, %arg4: memref<1x16x256xbf16, #tpu.memory_space<vmem>>, %arg5: memref<16x1xf32, #tpu.memory_space<vmem>>, %arg6: memref<16x1xf32, #tpu.memory_space<vmem>>) attributes {dimension_semantics = [#tpu.dimension_semantics<arbitrary>, #tpu.dimension_semantics<arbitrary>], iteration_bounds = array<i64: 2, 2>, scalar_prefetch = 0 : i64, scratch_operands = 0 : i64, tpu.core_type = #tpu.core_type<tc>, window_params = [{transform_indices = @transform_0, window_bounds = array<i64: 1, 112, 256>}, {pipeline_mode = #tpu.pipeline_mode<synchronous>, transform_indices = @transform_1, window_bounds = array<i64: 16, 112>}, {transform_indices = @transform_2, window_bounds = array<i64: 1, 16, 256>}, {pipeline_mode = #tpu.pipeline_mode<synchronous>, transform_indices = @transform_3, window_bounds = array<i64: 16, 1>}, {pipeline_mode = #tpu.pipeline_mode<synchronous>, transform_indices = @transform_4, window_bounds = array<i64: 16, 1>}]} {
    %c0 = arith.constant 0 : index
    %c0_0 = arith.constant 0 : index
    %0 = vector.load %arg3[%c0, %c0_0] : memref<16x112xbf16, #tpu.memory_space<vmem>>, vector<16x112xbf16>
    %c0_1 = arith.constant 0 : index
    %c0_2 = arith.constant 0 : index
    %c0_3 = arith.constant 0 : index
    %1 = vector.load %arg2[%c0_1, %c0_2, %c0_3] : memref<1x112x256xbf16, #tpu.memory_space<vmem>>, vector<1x112x256xbf16>
    %2 = vector.shape_cast %1 : vector<1x112x256xbf16> to vector<112x256xbf16>
    %cst = arith.constant dense<0.000000e+00> : vector<16x256xf32>
    %3 = tpu.matmul %0, %2, %cst {dimension_numbers = #tpu.dot_dimension_numbers<[1], [0], [0], [1], [0, 0, 1, 1], [], []>} : vector<16x112xbf16>, vector<112x256xbf16>, vector<16x256xf32> -> vector<16x256xf32>
    %4 = arith.truncf %3 : vector<16x256xf32> to vector<16x256xbf16>
    %c0_4 = arith.constant 0 : index
    %c0_5 = arith.constant 0 : index
    %c0_6 = arith.constant 0 : index
    %5 = vector.load %arg4[%c0_4, %c0_5, %c0_6] : memref<1x16x256xbf16, #tpu.memory_space<vmem>>, vector<1x16x256xbf16>
    %6 = vector.shape_cast %5 : vector<1x16x256xbf16> to vector<16x256xbf16>
    %7 = vector.shape_cast %4 : vector<16x256xbf16> to vector<1x16x256xbf16>
    tpu.vector_store %arg4[%c0_4, %c0_5, %c0_6], %7 {strides = array<i32>} : memref<1x16x256xbf16, #tpu.memory_space<vmem>>, vector<1x16x256xbf16>,
    %c0_i32 = arith.constant 0 : i32
    %8 = arith.cmpi eq, %arg0, %c0_i32 : i32
    %c0_i32_7 = arith.constant 0 : i32
    %9 = arith.cmpi eq, %arg1, %c0_i32_7 : i32
    %10 = arith.andi %8, %9 : i1
    %11 = arith.extui %10 : i1 to i32
    %c0_i32_8 = arith.constant 0 : i32
    %12 = arith.cmpi ne, %11, %c0_i32_8 : i32
    scf.if %12 {
      %cst_19 = arith.constant 0.000000e+00 : f32
      %24 = vector.broadcast %cst_19 : f32 to vector<16x1xf32>
      %c0_20 = arith.constant 0 : index
      %c0_21 = arith.constant 0 : index
      %25 = vector.load %arg5[%c0_20, %c0_21] : memref<16x1xf32, #tpu.memory_space<vmem>>, vector<16x1xf32>
      tpu.vector_store %arg5[%c0_20, %c0_21], %24 {strides = array<i32>} : memref<16x1xf32, #tpu.memory_space<vmem>>, vector<16x1xf32>,
      %cst_22 = arith.constant 0.000000e+00 : f32
      %26 = vector.broadcast %cst_22 : f32 to vector<16x1xf32>
      %c0_23 = arith.constant 0 : index
      %c0_24 = arith.constant 0 : index
      %27 = vector.load %arg6[%c0_23, %c0_24] : memref<16x1xf32, #tpu.memory_space<vmem>>, vector<16x1xf32>
      tpu.vector_store %arg6[%c0_23, %c0_24], %26 {strides = array<i32>} : memref<16x1xf32, #tpu.memory_space<vmem>>, vector<16x1xf32>,
    } else {
    }
    %c0_9 = arith.constant 0 : index
    %c0_10 = arith.constant 0 : index
    %13 = vector.load %arg5[%c0_9, %c0_10] : memref<16x1xf32, #tpu.memory_space<vmem>>, vector<16x1xf32>
    %cst_11 = arith.constant dense<0.000000e+00> : vector<16xf32>
    %14 = vector.multi_reduction <add>, %3, %cst_11 [1] : vector<16x256xf32> to vector<16xf32>
    %15 = vector.shape_cast %14 : vector<16xf32> to vector<16x1xf32>
    %16 = arith.addf %13, %15 : vector<16x1xf32>
    %c0_12 = arith.constant 0 : index
    %c0_13 = arith.constant 0 : index
    %17 = vector.load %arg5[%c0_12, %c0_13] : memref<16x1xf32, #tpu.memory_space<vmem>>, vector<16x1xf32>
    tpu.vector_store %arg5[%c0_12, %c0_13], %16 {strides = array<i32>} : memref<16x1xf32, #tpu.memory_space<vmem>>, vector<16x1xf32>,
    %c0_14 = arith.constant 0 : index
    %c0_15 = arith.constant 0 : index
    %18 = vector.load %arg6[%c0_14, %c0_15] : memref<16x1xf32, #tpu.memory_space<vmem>>, vector<16x1xf32>
    %19 = arith.mulf %3, %3 : vector<16x256xf32>
    %cst_16 = arith.constant dense<0.000000e+00> : vector<16xf32>
    %20 = vector.multi_reduction <add>, %19, %cst_16 [1] : vector<16x256xf32> to vector<16xf32>
    %21 = vector.shape_cast %20 : vector<16xf32> to vector<16x1xf32>
    %22 = arith.addf %18, %21 : vector<16x1xf32>
    %c0_17 = arith.constant 0 : index
    %c0_18 = arith.constant 0 : index
    %23 = vector.load %arg6[%c0_17, %c0_18] : memref<16x1xf32, #tpu.memory_space<vmem>>, vector<16x1xf32>
    tpu.vector_store %arg6[%c0_17, %c0_18], %22 {strides = array<i32>} : memref<16x1xf32, #tpu.memory_space<vmem>>, vector<16x1xf32>,
    return
  }
  func.func @transform_0(%arg0: i32, %arg1: i32) -> (i32, i32, i32) {
    %c0_i32 = arith.constant 0 : i32
    %c0_i32_0 = arith.constant 0 : i32
    return %arg0, %c0_i32, %arg1 : i32, i32, i32
  }
  func.func @transform_1(%arg0: i32, %arg1: i32) -> (i32, i32) {
    %c0_i32 = arith.constant 0 : i32
    %c0_i32_0 = arith.constant 0 : i32
    %c0_i32_1 = arith.constant 0 : i32
    return %c0_i32, %c0_i32_0 : i32, i32
  }
  func.func @transform_2(%arg0: i32, %arg1: i32) -> (i32, i32, i32) {
    %c0_i32 = arith.constant 0 : i32
    %c0_i32_0 = arith.constant 0 : i32
    return %arg0, %c0_i32, %arg1 : i32, i32, i32
  }
  func.func @transform_3(%arg0: i32, %arg1: i32) -> (i32, i32) {
    %c0_i32 = arith.constant 0 : i32
    %c0_i32_0 = arith.constant 0 : i32
    %c0_i32_1 = arith.constant 0 : i32
    return %c0_i32, %c0_i32_0 : i32, i32
  }
  func.func @transform_4(%arg0: i32, %arg1: i32) -> (i32, i32) {
    %c0_i32 = arith.constant 0 : i32
    %c0_i32_0 = arith.constant 0 : i32
    %c0_i32_1 = arith.constant 0 : i32
    return %c0_i32, %c0_i32_0 : i32, i32
  }
}

</mosaic_0001>

<bundles_post_ra>
// kernel: tpu_custom_call.1
= control target key start
LH: loop header
LB: loop body
LE: loop exit
PB: predicated region body
PF: predicated region fallthrough
CT: control target
= control target key end

     0   :  { %s1180_s0 = inlined_call_operand.hbm [shape: bf16[2,112,512], index: 0, kind: input, shape index: {}]   ;;  %s1181_s1 = inlined_call_operand.hbm [shape: bf16[16,112], index: 1, kind: input, shape index: {}]   ;;  %s1182_s2 = inlined_call_operand.hbm [shape: bf16[2,16,512], index: 2, kind: output, shape index: {0}]   ;;  %s1183_s3 = inlined_call_operand.vmem [shape: f32[16,1], index: 3, kind: output, shape index: {1}]   ;;  %s1184_s4 = inlined_call_operand.vmem [shape: f32[16,1], index: 4, kind: output, shape index: {2}]  }
   0x1   :  { %1197 = sst [smem:[#allocation17_spill]] %s1181_s1 }
   0x2   :  { %1198 = sst [smem:[#allocation18_spill]] %s1182_s2 }
   0x3   :  { %10 = vsyncpa [#allocation3], 0 }
   0x4   :  { %12 = vsyncpa [#allocation3 + $0x1], 0 }
   0x5   :  { %13 = vsyncpa [#allocation6], 0 }
   0x6   :  { %14 = vsyncpa [#allocation4], 0 }
   0x7   :  { %16 = vsyncpa [#allocation4 + $0x1], 0  ;;  %s921_s15 = smov 0   ;;  %s923_s16 = smov 0  }
   0x8   :  { %s925_s17 = smov 0   ;;  %s927_s18 = smov 0  }
   0x9   :  { %s929_s19 = smov 0   ;;  %s931_s20 = smov 0  }
   0xa   :  { %s933_s21 = smov 0   ;;  %s935_s22 = smov 0  }
   0xb LB: > { %1199 = sst [smem:[#allocation11_spill]] %s853_s15  ;;  %s567_s23 = sadd.s32 4294967295, %s881_s22   ;;  %s881_s22 = sphi %s935_s22, %s22_s22   ;;  %s877_s21 = sphi %s933_s21, %s1231_s21   ;;  %s873_s20 = sphi %s931_s20, %s1230_s20   ;;  %s869_s19 = sphi %s929_s19, %s1229_s19   ;;  %s865_s18 = sphi %s927_s18, %s1224_s18   ;;  %s861_s17 = sphi %s925_s17, %s1228_s17   ;;  %s857_s16 = sphi %s923_s16, %s1227_s16   ;;  %s853_s15 = sphi %s921_s15, %s1226_s15  }
   0xc   : > { %1200 = sst [smem:[#allocation12_spill]] %s873_s20  ;;  %s568_s24 = sadd.s32 4294967294, %s881_s22  }
   0xd   : > { %1201 = sst [smem:[#allocation13_spill]] %s881_s22  ;;  %p50_p0 = scmp.ne.s32.totalorder %s861_s17, %s857_s16 }
   0xe   : > { %p51_p1 = scmp.eq.s32.totalorder %s881_s22, 0  ;;  %p56_p2 = scmp.ne.s32.totalorder %s857_s16, %s853_s15 }
   0xf   : > { %p969_p3 = scmp.eq.s32.totalorder %s567_s23, 0  ;;  %p103_p4 = scmp.eq.s32.totalorder %s567_s23, 3 }
  0x10   : > { %p973_p5 = por %p51_p1, %p50_p0  ;;  %p109_p6 = scmp.eq.s32.totalorder %s568_s24, 3 }
  0x11   : > { %p979_p7 = por %p969_p3, %p56_p2  ;;  %p983_p8 = por %p103_p4, %p50_p0 }
  0x12   : > { %p987_p9 = por %p109_p6, %p56_p2  ;;  %p569_p10 = scmp.ge.s32.totalorder %s881_s22, 1 }
  0x13   : > { %s1204_s28 = scalar_select %p979_p7, 1, 0 }
  0x14   : > { %s1205_s29 = scalar_select %p983_p8, 1, 0 }
  0x15   : > { %s1207_s30 = scalar_select %p987_p9, 1, 0 }
  0x16   : > { %1206 = sst [smem:[#allocation14_spill]] %s1205_s29  ;;  %p158_p11 = scmp.lt.s32.totalorder %s881_s22, 5 }
  0x17   : > { %1208 = sst [smem:[#allocation15_spill]] %s1207_s30  ;;  %s883_s6 = smov [#allocation5]  }
  0x18   : > { %p993_p12 = pnand %p569_p10, %p158_p11  ;;  %s170_s7 = sshll.u32 %s883_s6, 4  ;;  %s171_s7 = int_to_ptr.vmem [resolvable:$true] %s170_s7 }
  0x19   : > { %p627_p0 = scmp.lt.s32.totalorder %s881_s22, 4  ;;  %s738_s10 = scalar_lea.vmem %s171_s7, 128 }
  0x1a   : > { %s1209_s5 = scalar_select %p993_p12, 1, 0 }
  0x1b   : > { %p614_p13 = pneg %p993_p12  ;;  %p1008_p2 = pnand %p627_p0, %p973_p5 }
  0x1c   : > { %p739_p6 = scmp.ne.s32.totalorder %s171_s7, %s738_s10  ;;  %p746_p9 = scmp.lt.s32.totalorder %s171_s7, %s171_s7 }
  0x1d   : > { %p1002_p1 = pnand %p614_p13, %p969_p3  ;;  %p747_p8 = scmp.lt.s32.totalorder %s738_s10, %s738_s10 }
  0x1f   : > { %p729_p4 = pneg %p1002_p1  ;;  %p748_p7 = por %p747_p8, %p746_p9 }
  0x21   : > { %p741_p10 = pnand %p739_p6, %p729_p4 }
  0x23   : > { %p742_p11 = pneg %p741_p10 }
  0x25   : > { %p749_p12 = pnand %p748_p7, %p742_p11 }
  0x27   : > { %752 = shalt.err (!%p749_p12)
}
  0x28   : > { %s884_s11 = smov 64   ;;  %s885_s12 = smov 4  }
  0x29   : > { %s1212_s1 = sld [smem:[#allocation17_spill]]  ;;  %s31_s23 = sadd.s32 1, %s873_s20 }
  0x2a   : > { %p32_p5 = scmp.ge.s32.totalorder %s31_s23, 2  ;;  %s34_s24 = sadd.s32 1, %s877_s21 }
  0x2b   : > { %s184_s27 = sand.u32 1, %s861_s17   ;;  %s572_s6 = sshll.u32 %s873_s20, 1 }
  0x2c   : > { %s1233_s23 = smov (%p32_p5, %s31_s23), 0  ;;  %s1235_s24 = smov (!%p32_p5, %s34_s24), %s877_s21 }
  0x2d   : > { %1213 = sst [smem:[#allocation16_spill]] %s1233_s23  ;;  %s39_s10 = ssub.s32 %s873_s20, %s1233_s23 }
  0x2e   : > { %p36_p7 = scmp.ge.s32.totalorder %s1235_s24, 2  ;;  %s603_s25 = smul.u32 112, %s184_s27 }
  0x2f   : > { %617 = dma.hbm_to_vmem [thread:$0]  (!%p1002_p1), %s1212_s1, 128, %s171_s7, [#allocation6], %s884_s11, %s884_s11, %s885_s12  }
  0x30   : > { %s604_s8 = smul.u32 56, %s877_s21  ;;  %s1237_s24 = smov (%p36_p7, %s1235_s24), 0 }
  0x31   : > { %s38_s11 = ssub.s32 %s877_s21, %s1237_s24  ;;  %s188_s15 = scalar_lea.vmem [#allocation2], %s603_s25 }
  0x32   : > { %s194_s7 = sadd.s32 %s604_s8, %s572_s6  ;;  %s40_s13 = sor.u32 %s39_s10, %s38_s11 }
  0x33   : > { %s573_s12 = sshll.u32 %s194_s7, 6  ;;  %p41_p8 = scmp.eq.s32.totalorder %s40_s13, 0 }
  0x34   : > { %s196_s30 = scalar_lea.hbm %s1180_s0, %s573_s12  ;;  %s197_s22 = sshll.u32 %s188_s15, 4  ;;  %s198_s22 = int_to_ptr.vmem [resolvable:$true] %s197_s22 }
  0x35   : > { %s1214_s23 = sadd.s32 1, %s861_s17  ;;  %s185_s2 = scalar_lea.sflag [#allocation3], %s184_s27 }
  0x36   : > { %s1039_s20 = scalar_select %p41_p8, %s861_s17, %s1214_s23  }
  0x37   : > { %p755_p9 = pneg %p1008_p2  ;;  %s766_s29 = scalar_lea.vmem %s198_s22, 1792 }
  0x38   : > { %p767_p12 = scmp.ne.s32.totalorder %s198_s22, %s766_s29  ;;  %s886_s6 = smov [#allocation2]  }
  0x39   : > { %s771_s10 = sshll.u32 %s886_s6, 4  ;;  %s772_s10 = int_to_ptr.vmem [resolvable:$false] %s771_s10 }
  0x3a   : > { %p769_p13 = pnand %p767_p12, %p755_p9  ;;  %s773_s8 = scalar_lea.vmem %s772_s10, 3584 }
  0x3b   : > { %p774_p1 = scmp.lt.s32.totalorder %s198_s22, %s772_s10  ;;  %p775_p4 = scmp.lt.s32.totalorder %s773_s8, %s766_s29 }
  0x3c   : > { %p770_p0 = pneg %p769_p13 }
  0x3d   : > { %p776_p6 = por %p775_p4, %p774_p1 }
  0x3f   : > { %p777_p10 = pnand %p776_p6, %p770_p0 }
  0x41   : > { %780 = shalt.err (!%p777_p10)
}
  0x42   : > { %s887_s1 = smov 256   ;;  %s888_s15 = smov 128  }
  0x43   : > { %s889_s25 = smov 8   ;;  %p1215_p11 = scmp.ne.s32.totalorder %s1209_s5, 0 }
  0x44   : > { %621 = dma.hbm_to_vmem [thread:$0]  (!%p1008_p2), %s196_s30, 1792, %s198_s22, %s185_s2, %s887_s1, %s888_s15, %s889_s25  }
  0x45   : > { %209 = sbr.rel (%p1215_p11) target bundleno = 460 (0x1cc), region = 28  ;;  %s1048_s23 = sand.u32 (!%p1215_p11), 1, %s857_s16  }
  0x46   : > { %s605_s27 = smul.u32 (!%p1215_p11), 112, %s1048_s23  ;;  %s212_s29 = scalar_lea.sflag (!%p1215_p11), [#allocation3], %s1048_s23 }
  0x47   : > { %p1216_p5 = scmp.ne.s32.totalorder (!%p1215_p11), %s1204_s28, 0 }
  0x48   : > { %s1052_s7 = scalar_lea.vmem (!%p1215_p11), [#allocation2], %s605_s27 }
  0x4a   : > { %840 = dma.done.wait (%p1216_p5), %s212_s29, 1792  }
  0x4b   : > { %842 = vsyncadd (%p1216_p5), %s212_s29, 4294965504 }
  0x4c   : > { %844 = dma.done.wait (%p969_p3), [#allocation6], 128  }
  0x4d   : > { %846 = vsyncadd (%p969_p3), [#allocation6], 4294967168  ;;  %v890_v0 = vmov 0   ;;  %v705_v1 = vld [vmem:[%s1052_s7 + $0x64] ss:$8 sps:$4 sm:$0xff]   ;;  %vm338_vm0 = vcmask 916480  }
  0x4e   : > { %374 = vmatprep.mubr.bf16.mxu0 %v890_v0  ;;  %v707_v2 = vld [vmem:[%s1052_s7 + $0x60] ss:$8 sps:$4 sm:$0xff]   ;;  %344 = vmatprep.subr.bf16.mxu0 %v705_v1  ;;  %v708_v3 = vld [vmem:[%s1052_s7 + $0x54] ss:$8 sps:$4 sm:$0xff]   ;;  %v710_v4 = vld [vmem:[%s1052_s7 + $0x50] ss:$8 sps:$4 sm:$0xff]  }
  0x4f   : > { %345 = vmatpush1.bf16.msra.mxu0 %v707_v2  ;;  %v711_v5 = vld [vmem:[%s1052_s7 + $0x44] ss:$8 sps:$4 sm:$0xff]   ;;  %v713_v6 = vld [vmem:[%s1052_s7 + $0x40] ss:$8 sps:$4 sm:$0xff]   ;;  %v714_v7 = vld [vmem:[%s1052_s7 + $0x34] ss:$8 sps:$4 sm:$0xff]  }
  0x50   : > { %346 = vmatprep.subr.bf16.mxu0 %v708_v3  ;;  %v716_v8 = vld [vmem:[%s1052_s7 + $0x30] ss:$8 sps:$4 sm:$0xff]   ;;  %v717_v9 = vld [vmem:[%s1052_s7 + $0x24] ss:$8 sps:$4 sm:$0xff]   ;;  %v719_v10 = vld [vmem:[%s1052_s7 + $0x20] ss:$8 sps:$4 sm:$0xff]  }
  0x51   : > { %v720_v11 = vld [vmem:[%s1052_s7 + $0x14] ss:$8 sps:$4 sm:$0xff]   ;;  %v722_v12 = vld [vmem:[%s1052_s7 + $0x10] ss:$8 sps:$4 sm:$0xff]   ;;  %v723_v13 = vld [vmem:[%s1052_s7 + $0x4] ss:$8 sps:$4 sm:$0xff]  }
  0x52   : > { %v725_v14 = vld [vmem:[%s1052_s7] ss:$8 sps:$4 sm:$0xff]   ;;  %p399_p3 = scmp.eq.s32.totalorder %s869_s19, 0  ;;  %p400_p2 = scmp.eq.s32.totalorder %s865_s18, 0 }
  0x53   : > { %347 = vmatpush1.bf16.msra.mxu0 %v710_v4  ;;  %v726_v15 = vld [vmem:[#allocation5] sm:$0xff]   ;;  %s576_s2 = sshll.u32 %s1048_s23, 4 }
  0x54   : > { %348 = vmatprep.subr.bf16.mxu0 %v711_v5  ;;  %p401_p7 = pnand %p400_p2, %p399_p3  ;;  %s1079_s22 = scalar_lea.vmem [#allocation7], %s576_s2 }
  0x57   : > { %349 = vmatpush1.bf16.msra.mxu0 %v713_v6 }
  0x58   : > { %350 = vmatprep.subr.bf16.mxu0 %v714_v7 }
  0x5b   : > { %351 = vmatpush1.bf16.msra.mxu0 %v716_v8 }
  0x5c   : > { %352 = vmatprep.subr.bf16.mxu0 %v717_v9 }
  0x5f   : > { %353 = vmatpush1.bf16.msra.mxu0 %v719_v10 }
  0x60   : > { %354 = vmatprep.subr.bf16.mxu0 %v720_v11 }
  0x63   : > { %355 = vmatpush1.bf16.msra.mxu0 %v722_v12 }
  0x64   : > { %356 = vmatprep.subr.bf16.mxu0 %v723_v13 }
  0x67   : > { %357 = vmatpush1.bf16.msra.mxu0 %v725_v14 }
  0x6a   : > { %592 = vmatmul.mubr.msk.bf16.vlgmr.msra.gmra.mxu0 %vm338_vm0, %v726_v15 }
 0x12a   : > { %v376_v16 = vpop.f32.mrf.mxu0 }
 0x12c   : > { %v378_v17 = vpop.f32.mrf.mxu0 }
 0x12d   : > { %v601_v18 = vpack.c.bf16 %v378_v17, %v376_v16 }
 0x12e   : > { %v380_v19 = vpop.f32.mrf.mxu0 }
 0x12f   : > { %397 = vst [vmem:[%s1079_s22] sm:$0xff] %v601_v18  ;;  %404 = sbr.rel (%p401_p7) target bundleno = 311 (0x137), region = 40 }
 0x130   : > { %v382_v20 = vpop.f32.mrf.mxu0 }
 0x131   : > { %v602_v21 = vpack.c.bf16 %v382_v20, %v380_v19 }
 0x133   : > { %398 = vst [vmem:[%s1079_s22 + $0x8] sm:$0xff] %v602_v21 }
 0x134   : > { %vm405_vm1 = vcmask 7168   ;;  %v891_v22 = vmov 0.0  }
 0x135   : > { %406 = vst.msk [vmem:[%s1183_s3] sm:$0xff] %vm405_vm1, %v891_v22  ;;  %407 = vst.msk [vmem:[%s1183_s3 + $0x8] sm:$0xff] %vm405_vm1, %v891_v22 }
 0x136   : > { %408 = vst.msk [vmem:[%s1184_s4] sm:$0xff] %vm405_vm1, %v891_v22  ;;  %409 = vst.msk [vmem:[%s1184_s4 + $0x8] sm:$0xff] %vm405_vm1, %v891_v22 }
 0x137 PF: > { %v425_v23 = vmul.f32 %v376_v16, %v376_v16  ;;  %v426_v24 = vmul.f32 %v378_v17, %v378_v17  ;;  %v412_v25 = vadd.f32 %v378_v17, %v376_v16  ;;  %v427_v26 = vmul.f32 %v380_v19, %v380_v19  ;;  %s1217_s14 = sld [smem:[#allocation14_spill]]  ;;  %s596_s6 = sshll.u32 %s865_s18, 1 }
 0x138   : > { %v428_v27 = vmul.f32 %v382_v20, %v382_v20  ;;  %v415_v29 = vadd.f32 %v382_v20, %v380_v19  ;;  %s597_s10 = sshll.u32 %s869_s19, 3  ;;  %s455_s15 = sshll.u32 %s1079_s22, 4  ;;  %s1103_s15 = int_to_ptr.vmem [resolvable:$true] %s455_s15 }
 0x139   : > { %v429_v28 = vadd.f32 %v426_v24, %v425_v23  ;;  %413 = vadd.xlane.f32.xlu0 %v412_v25  ;;  %s452_s8 = sadd.s32 %s597_s10, %s596_s6  ;;  %s1218_s29 = sld [smem:[#allocation18_spill]] }
 0x13a   : > { %v432_v30 = vadd.f32 %v428_v27, %v427_v26  ;;  %s598_s1 = sshll.u32 %s452_s8, 6  ;;  %s440_s2 = scalar_lea.sflag [#allocation4], %s1048_s23 }
 0x13b   : > { %430 = vadd.xlane.f32.xlu1 %v429_v28  ;;  %s781_s26 = scalar_lea.vmem %s1103_s15, 256  ;;  %s892_s18 = smov [#allocation7]  }
 0x13c   : > { %p782_p8 = scmp.ne.s32.totalorder %s1103_s15, %s781_s26  ;;  %s785_s19 = sshll.u32 %s892_s18, 4  ;;  %s786_s19 = int_to_ptr.vmem [resolvable:$false] %s785_s19 }
 0x13d   : > { %416 = vadd.xlane.f32.xlu0 %v415_v29  ;;  %p1219_p9 = scmp.ne.s32.totalorder %s1217_s14, 0  ;;  %s787_s22 = scalar_lea.vmem %s786_s19, 512 }
 0x13e   : > { %p788_p0 = scmp.lt.s32.totalorder %s1103_s15, %s786_s19  ;;  %p789_p1 = scmp.lt.s32.totalorder %s787_s22, %s781_s26 }
 0x13f   : > { %433 = vadd.xlane.f32.xlu1 %v432_v30  ;;  %s1101_s7 = scalar_lea.hbm %s1218_s29, %s598_s1  ;;  %p783_p12 = pnand %p782_p8, %p1219_p9 }
 0x140   : > { %p790_p4 = por %p789_p1, %p788_p0 }
 0x141   : > { %p784_p13 = pneg %p783_p12 }
 0x143   : > { %p791_p6 = pnand %p790_p4, %p784_p13 }
 0x145   : > { %794 = shalt.err (!%p791_p6)
}
 0x146   : > { %s795_s28 = scalar_lea.hbm %s1101_s7, 256  ;;  %s799_s9 = scalar_lea.hbm %s1218_s29, 1024 }
 0x147   : > { %p796_p10 = scmp.ne.s32.totalorder %s1101_s7, %s795_s28  ;;  %p800_p3 = scmp.lt.s32.totalorder %s1101_s7, %s1218_s29 }
 0x148   : > { %p801_p2 = scmp.lt.s32.totalorder %s799_s9, %s795_s28 }
 0x149   : > { %p797_p11 = pnand %p796_p10, %p1219_p9 }
 0x14a   : > { %p802_p7 = por %p801_p2, %p800_p3 }
 0x14b   : > { %p798_p5 = pneg %p797_p11 }
 0x14d   : > { %p803_p8 = pnand %p802_p7, %p798_p5 }
 0x14f   : > { %806 = shalt.err (!%p803_p8)
}
 0x150   : > { %s893_s13 = smov 128   ;;  %s894_s6 = smov 256   ;;  %v410_v31 = vld [vmem:[%s1183_s3] sm:$0xff]  ;;  %vm420_vm2 = vcmask 7168   ;;  %v411_v36 = vld [vmem:[%s1183_s3 + $0x8] sm:$0xff] }
 0x151   : > { %s895_s10 = smov 8   ;;  %v423_v32 = vld [vmem:[%s1184_s4] sm:$0xff]  ;;  %v424_v38 = vld [vmem:[%s1184_s4 + $0x8] sm:$0xff] }
 0x152   : > { %612 = dma.vmem_to_hbm [thread:$0]  (%p1219_p9), %s1103_s15, 256, %s1101_s7, %s440_s2, %s893_s13, %s894_s6, %s895_s10  }
 0x1c2   : > { %v414_v33 = vpop.xlane.xlu0 %413 }
 0x1c3   : > { %v418_v34 = vadd.f32 %v414_v33, %v410_v31 }
 0x1c4   : > { %v431_v35 = vpop.xlane.xlu1 %430 }
 0x1c5   : > { %v435_v37 = vadd.f32 %v431_v35, %v423_v32  ;;  %421 = vst.msk [vmem:[%s1183_s3] sm:$0xff] %vm420_vm2, %v418_v34 }
 0x1c6   : > { %v417_v39 = vpop.xlane.xlu0 %416 }
 0x1c7   : > { %437 = vst.msk [vmem:[%s1184_s4] sm:$0xff] %vm420_vm2, %v435_v37  ;;  %v419_v40 = vadd.f32 %v417_v39, %v411_v36 }
 0x1c8   : > { %v434_v41 = vpop.xlane.xlu1 %433 }
 0x1c9   : > { %v436_v42 = vadd.f32 %v434_v41, %v424_v38  ;;  %422 = vst.msk [vmem:[%s1183_s3 + $0x8] sm:$0xff] %vm420_vm2, %v419_v40 }
 0x1cb   : > { %438 = vst.msk [vmem:[%s1184_s4 + $0x8] sm:$0xff] %vm420_vm2, %v436_v42 }
 0x1cc PF: > { %s1220_s9 = sld [smem:[#allocation13_spill]] }
 0x1cd   : > { %s1221_s11 = sld [smem:[#allocation11_spill]] }
 0x1ce   : > { %s1222_s12 = sld [smem:[#allocation15_spill]] }
 0x1d2   : > { %p629_p9 = scmp.ge.s32.totalorder %s1220_s9, 2 }
 0x1d3   : > { %s482_s13 = sand.u32 1, %s1221_s11  }
 0x1d4   : > { %p1223_p12 = scmp.ne.s32.totalorder %s1222_s12, 0  ;;  %s483_s6 = scalar_lea.sflag [#allocation4], %s482_s13 }
 0x1d6   : > { %p623_p13 = pnand %p629_p9, %p1223_p12 }
 0x1d8   : > { %p624_p0 = pneg %p623_p13 }
 0x1da   : > { %848 = dma.done.wait (%p624_p0), %s483_s6, 256  }
 0x1db   : > { %850 = vsyncadd (%p624_p0), %s483_s6, 4294967040  ;;  %s22_s22 = sadd.s32 1, %s1220_s9   ;;  %s1224_s18 = sld [smem:[#allocation12_spill]] }
 0x1dc   : > { %p19_p1 = scmp.ge.s32.totalorder %s22_s22, 6   ;;  %s1225_s10 = sld [smem:[#allocation16_spill]] }
 0x1dd   : > { %s1226_s15 = smov %s857_s16  ;;  %s1227_s16 = smov %s861_s17 }
 0x1de   : > { %s1228_s17 = smov %s1039_s20  ;;  %s1229_s19 = smov %s877_s21 }
 0x1df   : > { %s1231_s21 = smov %s1237_s24  ;;  %21 = sbr.rel (!%p19_p1) target bundleno = 11 (0xb), region = 97 }
 0x1e2   : > { %s1230_s20 = smov %s1225_s10 }
 0x1e4   :  { %488 = vsyncpa [#allocation3], 1 }
 0x1e5   :  { %490 = vsyncpa [#allocation3 + $0x1], 1 }
 0x1e6   :  { %491 = vsyncpa [#allocation6], 1 }
 0x1e7   :  { %492 = vsyncpa [#allocation4], 1 }
 0x1e8   :  { %494 = vsyncpa [#allocation4 + $0x1], 1 }

</bundles_post_ra>
